<compile_context>
chip_gen: v7x
topology: tpu7x:2x2x1
jax: 0.10.0
libtpu: 0.0.40
codegen_flags: <defaults>
</compile_context>

<pallas_src>
import math

import jax
import jax.numpy as jnp
from jax.experimental import pallas as pl
from jax.experimental.pallas import tpu as pltpu


def _layerscale_kernel(x_ref, g_ref, o_ref):
    # g_ref is (1, tn) and broadcasts over the row axis; compute in the promoted
    # dtype, cast once on store.
    o_ref[...] = (x_ref[...] * g_ref[...]).astype(o_ref.dtype)


def _round_up(v: int, m: int) -> int:
    return ((v + m - 1) // m) * m


def _vmem_capacity_bytes() -> int:
    """Physical VMEM per TensorCore; conservative v7x default if query fails."""
    try:
        cap = int(getattr(pltpu.get_tpu_info(), "vmem_capacity_bytes"))
        if cap > 0:
            return cap
    except Exception:
        pass
    return 64 * 1024 * 1024


def layer_scale(x: jax.Array, gamma: jax.Array, *,
                inplace: bool = False,
                vmem_budget_bytes: int | None = None) -> jax.Array:
    """Pallas implementation of LayerScale.forward: x * gamma (broadcast on last dim)."""
    orig_shape = x.shape
    D = orig_shape[-1]
    assert gamma.shape == (D,), f"gamma must be ({D},), got {gamma.shape}"

    rows = 1
    for s in orig_shape[:-1]:
        rows *= s
    if rows == 0 or D == 0:
        return x

    x2 = x.reshape(rows, D)
    g = gamma
    Dk = D

    # --- lane-density fold: make the minor axis a multiple of 128 so stores are
    # unmasked full-lane vst (biggest measured lever for small/odd D outputs).
    if D % 128 != 0:
        fold = math.lcm(D, 128) // D
        if fold > 1 and rows % fold == 0:
            Dk = D * fold
            rows //= fold
            x2 = x2.reshape(rows, Dk)      # contiguous row-major reshape: free
            g = jnp.tile(gamma, fold)      # gamma pattern repeats across folded lanes
    g2 = g.reshape(1, Dk)

    itemsize = jnp.dtype(x.dtype).itemsize
    g_itemsize = jnp.dtype(g2.dtype).itemsize
    sublane = max(8, 32 // itemsize)       # 8 f32, 16 bf16, 32 int8/fp8

    # --- per-generation working-set budget (2 buffers x (in + out) tile):
    # half of physical VMEM -> 64 MiB on v5e/v6e (128 MiB), 32 MiB on v7x (64 MiB).
    vmem_cap = _vmem_capacity_bytes()
    budget = vmem_budget_bytes if vmem_budget_bytes is not None else min(vmem_cap // 2, 64 << 20)

    # --- lane (column) tile: full width unless even a sublane-high row tile
    # exceeds the budget (very wide D); then chunk lanes in 128-multiples.
    row_floor = rows if rows < sublane else sublane
    tn = Dk
    if 4 * row_floor * Dk * itemsize > budget:
        tn = budget // (4 * row_floor * itemsize)
        tn = max(128, (tn // 128) * 128)
        tn = min(tn, _round_up(Dk, 128))
    n_col = pl.cdiv(Dk, tn)

    # --- row tile: bytes-based (as large as the budget allows; no fixed row cap),
    # then capped so the total grid has >= ~8 steps for pipelining + megacore.
    tm = budget // (4 * tn * itemsize)
    tm = max(sublane, (tm // sublane) * sublane)
    min_total_steps = 8
    needed_row_steps = pl.cdiv(min_total_steps, n_col)
    if needed_row_steps > 1:
        tm_cap = max(sublane, _round_up(pl.cdiv(rows, needed_row_steps), sublane))
        tm = min(tm, tm_cap)
    if tm >= rows:
        tm = rows                          # full-extent block is always legal
    n_row = pl.cdiv(rows, tm)

    # --- scoped VMEM limit: actual working set + margin, with headroom below
    # physical VMEM (<= ~96 MiB on 128-MiB chips, <= ~48 MiB on v7x).
    working_set = 4 * tm * tn * itemsize + 2 * tn * g_itemsize
    vmem_limit = int(min(max(working_set + (2 << 20), 16 << 20), (vmem_cap // 4) * 3))

    out2 = pl.pallas_call(
        _layerscale_kernel,
        out_shape=jax.ShapeDtypeStruct((rows, Dk), x.dtype),
        grid_spec=pltpu.PrefetchScalarGridSpec(
            num_scalar_prefetch=0,
            grid=(n_row, n_col),
            in_specs=[
                pl.BlockSpec((tm, tn), lambda i, j: (i, j)),  # x row/lane tile
                pl.BlockSpec((1, tn), lambda i, j: (0, j)),   # gamma, VMEM-resident
            ],
            out_specs=pl.BlockSpec((tm, tn), lambda i, j: (i, j)),
        ),
        compiler_params=pltpu.CompilerParams(
            dimension_semantics=("parallel", "parallel"),
            vmem_limit_bytes=vmem_limit,
        ),
        input_output_aliases=({0: 0} if inplace else {}),
    )(x2, g2)

    return out2.reshape(orig_shape)


if __name__ == "__main__":
    init_values = 1e-05
    key = jax.random.PRNGKey(0)
    keys = jax.random.split(key, 4)

    # Case 1: module's small test shape, D=32 (exercises the lcm lane-folding path).
    batch, seq, dim = 2, 8, 32
    gamma = init_values * jnp.ones((dim,), dtype=jnp.float32)
    x = jax.random.normal(keys[0], (batch, seq, dim), dtype=jnp.float32)
    out = jax.block_until_ready(layer_scale(x, gamma))
    ref = x * gamma
    assert out.shape == x.shape
    assert jnp.allclose(out, ref, atol=1e-6, rtol=1e-6), "mismatch (f32, D=32)"

    # Case 2: D=96 (non-power-of-two fold -> Dk=384, lane-dense).
    dim_b = 96
    gamma_b = init_values * jnp.ones((dim_b,), dtype=jnp.float32)
    x_b = jax.random.normal(keys[1], (2, 16, dim_b), dtype=jnp.float32)
    out_b = jax.block_until_ready(layer_scale(x_b, gamma_b))
    assert jnp.allclose(out_b, x_b * gamma_b, atol=1e-6, rtol=1e-6), "mismatch (f32, D=96)"

    # Case 3: bf16 activations with an f32 gamma parameter (compute in f32, store bf16).
    dim_c = 128
    gamma_c = init_values * jnp.ones((dim_c,), dtype=jnp.float32)
    x_c = jax.random.normal(keys[2], (2, 8, dim_c), dtype=jnp.bfloat16)
    out_c = jax.block_until_ready(layer_scale(x_c, gamma_c))
    ref_c = (x_c.astype(jnp.float32) * gamma_c).astype(jnp.bfloat16)
    assert jnp.allclose(out_c.astype(jnp.float32), ref_c.astype(jnp.float32),
                        atol=1e-2, rtol=1e-2), "mismatch (bf16, D=128)"

    # Case 4: enough rows to exercise a multi-step grid (>= 8 tiles) + inplace alias.
    x_d = jax.random.normal(keys[3], (2, 512, dim_c), dtype=jnp.float32)
    out_d = jax.block_until_ready(layer_scale(x_d, gamma_c, inplace=True))
    assert jnp.allclose(out_d, x_d * gamma_c, atol=1e-6, rtol=1e-6), "mismatch (f32, multi-tile)"

    print("KERNEL_OK")
</pallas_src>

<mosaic_0001>
module attributes {stable_mosaic.version = 11 : i64} {
  func.func @_layerscale_kernel(%arg0: i32, %arg1: i32, %arg2: memref<4x128xf32, #tpu.memory_space<vmem>>, %arg3: memref<1x128xf32, #tpu.memory_space<vmem>>, %arg4: memref<4x128xf32, #tpu.memory_space<vmem>>) attributes {dimension_semantics = [#tpu.dimension_semantics<parallel>, #tpu.dimension_semantics<parallel>], iteration_bounds = array<i64: 1, 1>, scalar_prefetch = 0 : i64, scratch_operands = 0 : i64, tpu.core_type = #tpu.core_type<tc>, window_params = [{transform_indices = @transform_0, window_bounds = array<i64: 4, 128>}, {transform_indices = @transform_1, window_bounds = array<i64: 1, 128>}, {transform_indices = @transform_2, window_bounds = array<i64: 4, 128>}]} {
    %c0 = arith.constant 0 : index
    %c0_0 = arith.constant 0 : index
    %0 = vector.load %arg2[%c0, %c0_0] : memref<4x128xf32, #tpu.memory_space<vmem>>, vector<4x128xf32>
    %c0_1 = arith.constant 0 : index
    %c0_2 = arith.constant 0 : index
    %1 = vector.load %arg3[%c0_1, %c0_2] : memref<1x128xf32, #tpu.memory_space<vmem>>, vector<1x128xf32>
    %2 = vector.broadcast %1 : vector<1x128xf32> to vector<4x128xf32>
    %3 = arith.mulf %0, %2 : vector<4x128xf32>
    %c0_3 = arith.constant 0 : index
    %c0_4 = arith.constant 0 : index
    %4 = vector.load %arg4[%c0_3, %c0_4] : memref<4x128xf32, #tpu.memory_space<vmem>>, vector<4x128xf32>
    tpu.vector_store %arg4[%c0_3, %c0_4], %3 {strides = array<i32>} : memref<4x128xf32, #tpu.memory_space<vmem>>, vector<4x128xf32>,
    return
  }
  func.func @transform_0(%arg0: i32, %arg1: i32) -> (i32, i32) {
    %c0_i32 = arith.constant 0 : i32
    return %arg0, %arg1 : i32, i32
  }
  func.func @transform_1(%arg0: i32, %arg1: i32) -> (i32, i32) {
    %c0_i32 = arith.constant 0 : i32
    %c0_i32_0 = arith.constant 0 : i32
    return %c0_i32, %arg1 : i32, i32
  }
  func.func @transform_2(%arg0: i32, %arg1: i32) -> (i32, i32) {
    %c0_i32 = arith.constant 0 : i32
    return %arg0, %arg1 : i32, i32
  }
}

</mosaic_0001>

<bundles_post_ra>
// kernel: tpu_custom_call.1
= control target key start
LH: loop header
LB: loop body
LE: loop exit
PB: predicated region body
PF: predicated region fallthrough
CT: control target
= control target key end

     0   :  { %7 = vsyncpa [#allocation3], 0  ;;  %s144_s0 = inlined_call_operand.hbm [shape: f32[4,128], index: 0, kind: input, shape index: {}]   ;;  %s145_s1 = inlined_call_operand.vmem [shape: f32[1,128], index: 1, kind: input, shape index: {}]   ;;  %s146_s2 = inlined_call_operand.hbm [shape: f32[4,128], index: 2, kind: output, shape index: {}]  }
   0x1   :  { %8 = vsyncpa [#allocation4], 0  ;;  %s100_s9 = smov [#allocation2]   ;;  %s52_s13 = scalar_lea.hbm %s144_s0, 64 }
   0x2   :  { %s15_s10 = sshll.u32 %s100_s9, 4  ;;  %p53_p0 = scmp.ne.s32.totalorder %s144_s0, %s52_s13  ;;  %s16_s10 = int_to_ptr.vmem [resolvable:$true] %s15_s10 }
   0x3   :  { %p56_p1 = scmp.lt.u32.totalorder %s52_s13, %s144_s0 }
   0x5   :  { %p58_p2 = pnand %p56_p1, %p53_p0 }
   0x7   :  { %61 = shalt.err (!%p58_p2)
}
   0x8   :  { %s62_s18 = scalar_lea.vmem %s16_s10, 64  ;;  %p67_p4 = scmp.lt.s32.totalorder %s16_s10, %s16_s10 }
   0x9   :  { %p63_p3 = scmp.ne.s32.totalorder %s16_s10, %s62_s18  ;;  %p68_p5 = scmp.lt.s32.totalorder %s62_s18, %s62_s18 }
   0xb   :  { %p69_p6 = por %p68_p5, %p67_p4 }
   0xd   :  { %p70_p7 = pnand %p69_p6, %p63_p3 }
   0xf   :  { %73 = shalt.err (!%p70_p7)
}
  0x10   :  { %18 = dma.hbm_to_vmem [thread:$0]  %s144_s0, 64, %s16_s10, [#allocation3]  }
  0x11   :  { %96 = dma.done.wait [#allocation3], 64  }
  0x12   :  { %97 = vsyncadd [#allocation3], 4294967232  ;;  %s101_s21 = smov [#allocation5]   ;;  %v24_v0 = vld [vmem:[#allocation2] sm:$0xf] }
  0x13   :  { %s40_s22 = sshll.u32 %s101_s21, 4  ;;  %v49_v1 = vld [vmem:[%s145_s1] ss:$0 sm:$0xff]  ;;  %s41_s22 = int_to_ptr.vmem [resolvable:$true] %s40_s22 }
  0x14   :  { %v32_v2 = vmul.f32 %v49_v1, %v24_v0  ;;  %s74_s25 = scalar_lea.vmem %s41_s22, 64  ;;  %p79_p9 = scmp.lt.s32.totalorder %s41_s22, %s41_s22 }
  0x15   :  { %p75_p8 = scmp.ne.s32.totalorder %s41_s22, %s74_s25  ;;  %p80_p10 = scmp.lt.s32.totalorder %s74_s25, %s74_s25 }
  0x16   :  { %33 = vst [vmem:[#allocation5] sm:$0xf] %v32_v2 }
  0x17   :  { %p81_p11 = por %p80_p10, %p79_p9 }
  0x19   :  { %p82_p12 = pnand %p81_p11, %p75_p8 }
  0x1b   :  { %85 = shalt.err (!%p82_p12)
}
  0x1c   :  { %s86_s27 = scalar_lea.hbm %s146_s2, 64 }
  0x1d   :  { %p87_p13 = scmp.ne.s32.totalorder %s146_s2, %s86_s27  ;;  %p90_p0 = scmp.lt.u32.totalorder %s86_s27, %s146_s2 }
  0x1f   :  { %p92_p1 = pnand %p90_p0, %p87_p13 }
  0x21   :  { %95 = shalt.err (!%p92_p1)
}
  0x22   :  { %43 = dma.vmem_to_hbm [thread:$0]  %s41_s22, 64, %s146_s2, [#allocation4]  }
  0x23   :  { %98 = dma.done.wait [#allocation4], 64  }
  0x24   :  { %99 = vsyncadd [#allocation4], 4294967232 }
  0x25   :  { %47 = vsyncpa [#allocation3], 1 }
  0x26   :  { %48 = vsyncpa [#allocation4], 1 }

</bundles_post_ra>
